<compile_context>
chip_gen: v7x
topology: tpu7x:2x2x1
jax: 0.10.0
libtpu: 0.0.40
codegen_flags: <defaults>
</compile_context>

<pallas_src>
import jax
import jax.numpy as jnp
from jax.experimental import pallas as pl
from jax.experimental.pallas import tpu as pltpu


_LANE = 128
_MIN_PALLAS_BYTES = 1 << 20  # below ~1 MiB, XLA's fused sigmoid wins


def _cdiv(a: int, b: int) -> int:
    return -(-a // b)


def _round_up(a: int, b: int) -> int:
    return _cdiv(a, b) * b


def _round_down(a: int, b: int) -> int:
    return (a // b) * b


def _vmem_budgets():
    """Generation-aware (target_tile_bytes, vmem_limit_cap_bytes).

    v7x-class parts have only 64 MiB physical VMEM -> ~4 MiB tiles and a
    <=48 MiB scoped limit.  v5e/v6e (128 MiB VMEM) can afford larger tiles to
    amortize the ~0.35 us/step overhead.  Unknown hardware -> assume the
    tightest generation (v7x).
    """
    vmem_phys = None
    try:
        info = pltpu.get_tpu_info()
        vmem_phys = int(getattr(info, "vmem_capacity_bytes", 0)) or None
    except Exception:
        vmem_phys = None
    if vmem_phys is None or vmem_phys <= (64 << 20):
        return 4 << 20, 48 << 20
    return 12 << 20, 96 << 20


def _sigmoid_kernel(preds_ref, probs_ref):
    # f32 compute on all generations (v5e has no bf16 VPU/EUP path); the
    # kernel is HBM-bound so the upcast is free relative to streaming.
    # TODO(synk): a bf16-native compute path on v6e/v7x would halve vreg
    #             traffic for bf16 inputs; kept f32 for uniform numerics.
    x = preds_ref[...].astype(jnp.float32)
    # One EUP transcendental per element; constants folded:
    #   sigmoid(x) = 0.5 * tanh(x / 2) + 0.5
    probs_ref[...] = (0.5 * jnp.tanh(0.5 * x) + 0.5).astype(probs_ref.dtype)


def pallas_sigmoid(preds: jax.Array, *, force_pallas: bool = False) -> jax.Array:
    """Elementwise sigmoid via a lane-dense, row-tiled Pallas TPU kernel.

    The input is flattened and retiled into a (rows, C) slab with C a
    multiple of 128, so stores are always full-width unmasked vst and tile
    bytes are bounded independently of the caller's shape.  Small inputs fall
    back to jax.nn.sigmoid unless `force_pallas=True`.
    """
    dtype = preds.dtype
    orig_shape = preds.shape
    total = int(preds.size)

    if total == 0 or not jnp.issubdtype(dtype, jnp.floating):
        return jax.nn.sigmoid(preds)

    itemsize = dtype.itemsize
    nbytes = total * itemsize
    if not force_pallas and nbytes < _MIN_PALLAS_BYTES:
        return jax.nn.sigmoid(preds)

    target_tile_bytes, vmem_cap = _vmem_budgets()

    # ---- Lane-dense retiling: (rows, C), C % 128 == 0 -----------------------
    C = _LANE * 8  # 1024 lanes per row
    if total < C:
        C = _round_up(total, _LANE)
    row_bytes = C * itemsize
    rows_needed = _cdiv(total, C)

    # Sublane packing unit for the dtype: 8 (4B) / 16 (2B) / 32 (1B).
    packing = {4: 8, 2: 16, 1: 32}.get(itemsize, 8)

    if rows_needed <= packing:
        # Tiny input: one full-extent block, single grid step.
        block_rows = rows_needed
    else:
        # Cap the tile bytes to the per-generation target ...
        by_budget = max(packing, _round_down(target_tile_bytes // row_bytes, packing))
        # ... and aim for >= 8 grid steps (>= 4 per TensorCore on v7x) so the
        # pipeline actually double-buffers instead of running one iteration.
        by_steps = max(packing, _round_down(rows_needed // 8, packing))
        block_rows = max(packing, min(by_budget, by_steps))

    grid = _cdiv(rows_needed, block_rows)
    # Keep the parallel axis even so v7x's two TensorCores split it evenly.
    if grid > 1 and grid % 2 == 1:
        grid += 1
    rows_padded = grid * block_rows

    # Pad the flat array so every tile (including the last) is full -> no
    # masked partial stores anywhere; padding is sliced off afterwards.
    pad = rows_padded * C - total
    x_flat = preds.reshape(-1)
    if pad:
        x_flat = jnp.pad(x_flat, (0, pad))
    x2d = x_flat.reshape(rows_padded, C)

    tile_bytes = block_rows * row_bytes
    # Real need: 2 double-buffered input tiles + 2 output tiles + slack,
    # clamped to the generation's safe scoped-VMEM ceiling.
    vmem_limit = int(min(vmem_cap, max(4 * tile_bytes + (2 << 20), 16 << 20)))

    out2d = pl.pallas_call(
        _sigmoid_kernel,
        out_shape=jax.ShapeDtypeStruct((rows_padded, C), dtype),
        grid_spec=pltpu.PrefetchScalarGridSpec(
            num_scalar_prefetch=0,
            grid=(grid,),
            in_specs=[pl.BlockSpec((block_rows, C), lambda i: (i, 0))],
            out_specs=pl.BlockSpec((block_rows, C), lambda i: (i, 0)),
        ),
        compiler_params=pltpu.CompilerParams(
            dimension_semantics=("parallel",),
            vmem_limit_bytes=vmem_limit,
        ),
    )(x2d)

    return out2d.reshape(-1)[:total].reshape(orig_shape)


class BaseModelJax:
    """JAX/Pallas port of BaseModel. No trainable parameters in the base class."""

    def __init__(self, model_path="synthetic", loss="bce", l2_coef=1e-4, device="tpu"):
        self.display_name = "BaseModel"
        self.model_path = model_path
        self.loss_type = loss
        self.l2_coef = l2_coef
        self.no_reg = 0.0 < l2_coef < 1.0
        self.device = device

    def log(self):
        print("Model params")
        print("\tmodel_path = " + str(self.model_path))
        print("\tloss_type = " + str(self.loss_type))
        print("\tl2_coef = " + str(self.l2_coef))
        print("\tdevice = " + str(self.device))

    def get_forward(self, feed_dict: dict) -> dict:
        # Abstract in the PyTorch base class; here we pass `preds` through.
        return {"preds": feed_dict["preds"]}

    def forward(self, feed_dict: dict, return_prob: bool = True,
                force_pallas: bool = False) -> dict:
        out_dict = self.get_forward(feed_dict)
        if return_prob:
            out_dict["probs"] = pallas_sigmoid(out_dict["preds"],
                                               force_pallas=force_pallas)
        return out_dict


if __name__ == "__main__":
    key = jax.random.PRNGKey(0)
    B, N = 8, 256  # small shapes: batch=8, num_candidates=256
    preds = jax.random.normal(key, (B, N), dtype=jnp.float32)

    model = BaseModelJax(model_path="synthetic", loss="bce", l2_coef=1e-4, device="tpu")
    # force_pallas=True so the Pallas kernel path is exercised even at this
    # tiny size (production-size inputs take the same path automatically).
    out = model.forward({"preds": preds}, return_prob=True, force_pallas=True)
    probs = jax.block_until_ready(out["probs"])

    # correctness check against pure-JAX reference
    ref = jax.nn.sigmoid(preds)
    assert probs.shape == preds.shape
    assert jnp.allclose(probs, ref, atol=1e-5, rtol=1e-5), "mismatch vs reference"
    print("KERNEL_OK")
</pallas_src>

<mosaic_0001>
module attributes {stable_mosaic.version = 11 : i64} {
  func.func @_sigmoid_kernel(%arg0: i32, %arg1: memref<2x1024xf32, #tpu.memory_space<vmem>>, %arg2: memref<2x1024xf32, #tpu.memory_space<vmem>>) attributes {dimension_semantics = [#tpu.dimension_semantics<parallel>], iteration_bounds = array<i64: 1>, scalar_prefetch = 0 : i64, scratch_operands = 0 : i64, tpu.core_type = #tpu.core_type<tc>, window_params = [{transform_indices = @transform_0, window_bounds = array<i64: 2, 1024>}, {transform_indices = @transform_1, window_bounds = array<i64: 2, 1024>}]} {
    %c0 = arith.constant 0 : index
    %c0_0 = arith.constant 0 : index
    %0 = vector.load %arg1[%c0, %c0_0] : memref<2x1024xf32, #tpu.memory_space<vmem>>, vector<2x1024xf32>
    %cst = arith.constant 5.000000e-01 : f32
    %1 = vector.broadcast %cst : f32 to vector<2x1024xf32>
    %2 = arith.mulf %1, %0 : vector<2x1024xf32>
    %3 = math.tanh %2 : vector<2x1024xf32>
    %cst_1 = arith.constant 5.000000e-01 : f32
    %4 = vector.broadcast %cst_1 : f32 to vector<2x1024xf32>
    %5 = arith.mulf %4, %3 : vector<2x1024xf32>
    %cst_2 = arith.constant 5.000000e-01 : f32
    %6 = vector.broadcast %cst_2 : f32 to vector<2x1024xf32>
    %7 = arith.addf %5, %6 : vector<2x1024xf32>
    %c0_3 = arith.constant 0 : index
    %c0_4 = arith.constant 0 : index
    %8 = vector.load %arg2[%c0_3, %c0_4] : memref<2x1024xf32, #tpu.memory_space<vmem>>, vector<2x1024xf32>
    tpu.vector_store %arg2[%c0_3, %c0_4], %7 {strides = array<i32>} : memref<2x1024xf32, #tpu.memory_space<vmem>>, vector<2x1024xf32>,
    return
  }
  func.func @transform_0(%arg0: i32) -> (i32, i32) {
    %c0_i32 = arith.constant 0 : i32
    %c0_i32_0 = arith.constant 0 : i32
    return %arg0, %c0_i32 : i32, i32
  }
  func.func @transform_1(%arg0: i32) -> (i32, i32) {
    %c0_i32 = arith.constant 0 : i32
    %c0_i32_0 = arith.constant 0 : i32
    return %arg0, %c0_i32 : i32, i32
  }
}

</mosaic_0001>

<bundles_post_ra>
// kernel: tpu_custom_call.1
= control target key start
LH: loop header
LB: loop body
LE: loop exit
PB: predicated region body
PF: predicated region fallthrough
CT: control target
= control target key end

     0   :  { %6 = vsyncpa [#allocation3], 0  ;;  %s138_s0 = inlined_call_operand.hbm [shape: f32[2,1024], index: 0, kind: input, shape index: {}]   ;;  %s139_s1 = inlined_call_operand.hbm [shape: f32[2,1024], index: 1, kind: output, shape index: {}]  }
   0x1   :  { %7 = vsyncpa [#allocation4], 0  ;;  %s102_s6 = smov [#allocation2]   ;;  %s54_s10 = scalar_lea.hbm %s138_s0, 256 }
   0x2   :  { %s14_s7 = sshll.u32 %s102_s6, 4  ;;  %p55_p0 = scmp.ne.s32.totalorder %s138_s0, %s54_s10  ;;  %s15_s7 = int_to_ptr.vmem [resolvable:$true] %s14_s7 }
   0x3   :  { %p58_p1 = scmp.lt.u32.totalorder %s54_s10, %s138_s0 }
   0x5   :  { %p60_p2 = pnand %p58_p1, %p55_p0 }
   0x7   :  { %63 = shalt.err (!%p60_p2)
}
   0x8   :  { %s64_s15 = scalar_lea.vmem %s15_s7, 256  ;;  %p69_p4 = scmp.lt.s32.totalorder %s15_s7, %s15_s7 }
   0x9   :  { %p65_p3 = scmp.ne.s32.totalorder %s15_s7, %s64_s15  ;;  %p70_p5 = scmp.lt.s32.totalorder %s64_s15, %s64_s15 }
   0xb   :  { %p71_p6 = por %p70_p5, %p69_p4 }
   0xd   :  { %p72_p7 = pnand %p71_p6, %p65_p3 }
   0xf   :  { %75 = shalt.err (!%p72_p7)
}
  0x10   :  { %17 = dma.hbm_to_vmem [thread:$0]  %s138_s0, 256, %s15_s7, [#allocation3]  }
  0x11   :  { %98 = dma.done.wait [#allocation3], 256  }
  0x12   :  { %99 = vsyncadd [#allocation3], 4294967040  ;;  %v21_v0 = vld [vmem:[#allocation2] sm:$0xff]  ;;  %v22_v1 = vld [vmem:[#allocation2 + $0x8] sm:$0xff]  ;;  %s103_s18 = smov [#allocation5]  }
  0x13   :  { %v23_v2 = vmul.f32 0.5, %v21_v0  ;;  %v24_v3 = vmul.f32 0.5, %v22_v1  ;;  %s39_s19 = sshll.u32 %s103_s18, 4  ;;  %s40_s19 = int_to_ptr.vmem [resolvable:$true] %s39_s19 }
  0x14   :  { %s76_s0 = scalar_lea.vmem %s40_s19, 256  ;;  %p81_p9 = scmp.lt.s32.totalorder %s40_s19, %s40_s19 }
  0x15   :  { %50 = vtanh.f32 %v23_v2  ;;  %p77_p8 = scmp.ne.s32.totalorder %s40_s19, %s76_s0  ;;  %p82_p10 = scmp.lt.s32.totalorder %s76_s0, %s76_s0 }
  0x16   :  { %52 = vtanh.f32 %v24_v3 }
  0x17   :  { %p83_p11 = por %p82_p10, %p81_p9 }
  0x19   :  { %p84_p12 = pnand %p83_p11, %p77_p8 }
  0x1f   :  { %v51_v4 = vpop.eup %50 }
  0x20   :  { %v53_v5 = vpop.eup %52  ;;  %v27_v6 = vmul.f32 0.5, %v51_v4 }
  0x21   :  { %v28_v7 = vmul.f32 0.5, %v53_v5 }
  0x22   :  { %v29_v8 = vadd.f32 0.5, %v27_v6 }
  0x23   :  { %v30_v9 = vadd.f32 0.5, %v28_v7 }
  0x24   :  { %31 = vst [vmem:[#allocation5] sm:$0xff] %v29_v8 }
  0x25   :  { %32 = vst [vmem:[#allocation5 + $0x8] sm:$0xff] %v30_v9 }
  0x26   :  { %87 = shalt.err (!%p84_p12)
}
  0x27   :  { %s88_s22 = scalar_lea.hbm %s139_s1, 256 }
  0x28   :  { %p89_p13 = scmp.ne.s32.totalorder %s139_s1, %s88_s22  ;;  %p92_p0 = scmp.lt.u32.totalorder %s88_s22, %s139_s1 }
  0x2a   :  { %p94_p1 = pnand %p92_p0, %p89_p13 }
  0x2c   :  { %97 = shalt.err (!%p94_p1)
}
  0x2d   :  { %42 = dma.vmem_to_hbm [thread:$0]  %s40_s19, 256, %s139_s1, [#allocation4]  }
  0x2e   :  { %100 = dma.done.wait [#allocation4], 256  }
  0x2f   :  { %101 = vsyncadd [#allocation4], 4294967040 }
  0x30   :  { %46 = vsyncpa [#allocation3], 1 }
  0x31   :  { %47 = vsyncpa [#allocation4], 1 }

</bundles_post_ra>
